<compile_context>
chip_gen: v5e
topology: v5e:2x2
jax: 0.10.0
libtpu: 0.0.40
codegen_flags: <defaults>
</compile_context>

<pallas_src>
import functools

import jax
import jax.numpy as jnp
from jax.experimental import pallas as pl
from jax.experimental.pallas import tpu as pltpu

LANE = 128        # lane width of a TPU vreg
IN = 10           # l1 fan-in
H1 = 32           # l1 fan-out (x1 width)
H2 = 32           # l2 fan-out
OUT = 7           # l3 fan-out (x3 width)
X1_OFF = 0        # x1 occupies lanes [0:32)   of the packed output slab
X3_OFF = H1       # x3 occupies lanes [32:39)  of the packed output slab


def mlp_kernel(x_ref, w1_ref, b1_ref, w2_ref, b2_ref, w3_ref, b3_ref, out_ref):
    """One batch tile of the fused MLP; x1 and x3 packed in a single 128-lane slab.

    w1/b1 place layer-1 outputs in lanes [0:32) (other lanes are exact zeros
    after ReLU of zero), w3/b3 place layer-3 outputs in lanes [32:39) (other
    lanes exact zeros), so `h1 + x3` is an exact lane-packing of both outputs.
    """
    x = x_ref[...]

    # layer 1: (tb, 10) @ (10, 128) -> x1 in lanes [0:32); padded lanes relu(0)=0
    h1 = jnp.dot(x, w1_ref[...], preferred_element_type=jnp.float32)
    h1 = jnp.maximum(h1 + b1_ref[...], 0.0)

    # layer 2: (tb, 128) @ (128, 32); padded rows of w2 are zero -> exact
    h2 = jnp.dot(h1, w2_ref[...], preferred_element_type=jnp.float32)
    h2 = jnp.maximum(h2 + b2_ref[...], 0.0)

    # layer 3: (tb, 32) @ (32, 128) -> x3 in lanes [32:39); other lanes exact zeros
    x3 = jnp.dot(h2, w3_ref[...], preferred_element_type=jnp.float32)
    x3 = x3 + b3_ref[...]

    # pack both outputs into one lane-dense 128-wide store (unmasked vst)
    out_ref[...] = (h1 + x3).astype(out_ref.dtype)


def _round_up(n, m):
    return -(-n // m) * m


def prepare_params(w1, b1, w2, b2, w3, b3):
    """Pad weights/biases to lane-dense kernel layouts ONCE (not per forward call).

    Weights are stored as (in, out) so the kernel computes x @ W.
    Returns kernel operands:
      w1p (10,128)  valid lanes [0:32)     b1p (1,128)
      w2p (128,32)  valid rows  [0:32)     b2  (1,32)
      w3p (32,128)  valid lanes [32:39)    b3p (1,128)
    """
    f32 = jnp.float32
    w1 = jnp.asarray(w1, f32); b1 = jnp.asarray(b1, f32).reshape(1, H1)
    w2 = jnp.asarray(w2, f32); b2 = jnp.asarray(b2, f32).reshape(1, H2)
    w3 = jnp.asarray(w3, f32); b3 = jnp.asarray(b3, f32).reshape(1, OUT)

    w1p = jnp.zeros((IN, LANE), f32).at[:, X1_OFF:X1_OFF + H1].set(w1)
    b1p = jnp.zeros((1, LANE), f32).at[:, X1_OFF:X1_OFF + H1].set(b1)
    w2p = jnp.zeros((LANE, H2), f32).at[X1_OFF:X1_OFF + H1, :].set(w2)
    w3p = jnp.zeros((H2, LANE), f32).at[:, X3_OFF:X3_OFF + OUT].set(w3)
    b3p = jnp.zeros((1, LANE), f32).at[:, X3_OFF:X3_OFF + OUT].set(b3)
    return (w1p, b1p, w2p, b2, w3p, b3p)


@functools.partial(jax.jit, static_argnames=("block_rows", "out_dtype"))
def mlp_forward(x, params, *, block_rows=2048, out_dtype=jnp.float32):
    """x: (B, 10), params from prepare_params. Returns (x3 (B,7), x1 (B,32))."""
    w1p, b1p, w2p, b2, w3p, b3p = params
    B = x.shape[0]

    # Batch tile: large tiles amortize ~0.35us/step grid overhead, but cap at
    # ceil(B/2) (8-aligned) so mid-size batches get >=2 parallel grid steps
    # (keeps both v7x TensorCores busy). Tiny batches get one minimal tile.
    tb = min(block_rows, _round_up(max((B + 1) // 2, 1), 8))
    Bp = _round_up(B, tb)
    if Bp != B:
        x = jnp.pad(x, ((0, Bp - B), (0, 0)))
    grid = (Bp // tb,)

    const = lambda i: (0, 0)        # weights/biases stay resident in VMEM
    row_tile = lambda i: (i, 0)     # batch-tiled arrays

    packed = pl.pallas_call(
        mlp_kernel,
        out_shape=jax.ShapeDtypeStruct((Bp, LANE), out_dtype),
        grid_spec=pltpu.PrefetchScalarGridSpec(
            num_scalar_prefetch=0,
            grid=grid,
            in_specs=[
                pl.BlockSpec((tb, IN), row_tile),     # x
                pl.BlockSpec((IN, LANE), const),      # w1 (lane-padded)
                pl.BlockSpec((1, LANE), const),       # b1 (lane-padded)
                pl.BlockSpec((LANE, H2), const),      # w2 (row-padded)
                pl.BlockSpec((1, H2), const),         # b2
                pl.BlockSpec((H2, LANE), const),      # w3 (lane-padded, offset 32)
                pl.BlockSpec((1, LANE), const),       # b3 (lane-padded, offset 32)
            ],
            out_specs=pl.BlockSpec((tb, LANE), row_tile),   # packed x1|x3 slab
        ),
        compiler_params=pltpu.CompilerParams(
            dimension_semantics=("parallel",),        # megacore on v7x
            vmem_limit_bytes=64 * 1024 * 1024,        # headroom vs v5e 16MiB default
        ),
    )(x, w1p, b1p, w2p, b2, w3p, b3p)

    # Views over the single packed slab; fused inside this jit (no extra pass).
    x1 = packed[:B, X1_OFF:X1_OFF + H1].astype(jnp.float32)
    x3 = packed[:B, X3_OFF:X3_OFF + OUT].astype(jnp.float32)
    return x3, x1


def init_params(key):
    """PyTorch nn.Linear-style init: U(-1/sqrt(fan_in), +1/sqrt(fan_in))."""
    def linear(key, fan_in, fan_out):
        kw, kb = jax.random.split(key)
        bound = 1.0 / jnp.sqrt(jnp.float32(fan_in))
        # stored pre-transposed as (in, out) so the kernel computes x @ W
        w = jax.random.uniform(kw, (fan_in, fan_out), jnp.float32, -bound, bound)
        b = jax.random.uniform(kb, (1, fan_out), jnp.float32, -bound, bound)
        return w, b

    k1, k2, k3 = jax.random.split(key, 3)
    w1, b1 = linear(k1, IN, H1)
    w2, b2 = linear(k2, H1, H2)
    w3, b3 = linear(k3, H2, OUT)
    return w1, b1, w2, b2, w3, b3


def reference_forward(x, w1, b1, w2, b2, w3, b3):
    h1 = jnp.maximum(x @ w1 + b1, 0.0)
    h2 = jnp.maximum(h1 @ w2 + b2, 0.0)
    x3 = h2 @ w3 + b3
    return x3, h1


if __name__ == "__main__":
    key = jax.random.PRNGKey(0)
    k_params, k_x = jax.random.split(key)

    raw_params = init_params(k_params)
    params = prepare_params(*raw_params)     # padded once, off the hot path

    batch = 8
    x = jax.random.normal(k_x, (batch, IN), jnp.float32)

    x3, x1 = mlp_forward(x, params)
    jax.block_until_ready((x3, x1))

    # numerical sanity-check against a pure-JAX reference
    x3_ref, x1_ref = reference_forward(x, *raw_params)
    assert x3.shape == (batch, OUT) and x1.shape == (batch, H1)
    assert jnp.allclose(x3, x3_ref, atol=1e-5, rtol=1e-5)
    assert jnp.allclose(x1, x1_ref, atol=1e-5, rtol=1e-5)

    # larger, non-tile-multiple batch exercising the multi-step parallel grid
    xb = jax.random.normal(jax.random.PRNGKey(1), (1000, IN), jnp.float32)
    x3b, x1b = mlp_forward(xb, params)
    jax.block_until_ready((x3b, x1b))
    x3b_ref, x1b_ref = reference_forward(xb, *raw_params)
    assert jnp.allclose(x3b, x3b_ref, atol=1e-5, rtol=1e-5)
    assert jnp.allclose(x1b, x1b_ref, atol=1e-5, rtol=1e-5)

    print("KERNEL_OK")
</pallas_src>

<mosaic_0001>
module attributes {stable_mosaic.version = 11 : i64} {
  func.func @mlp_kernel(%arg0: i32, %arg1: memref<8x10xf32, #tpu.memory_space<vmem>>, %arg2: memref<10x128xf32, #tpu.memory_space<vmem>>, %arg3: memref<1x128xf32, #tpu.memory_space<vmem>>, %arg4: memref<128x32xf32, #tpu.memory_space<vmem>>, %arg5: memref<1x32xf32, #tpu.memory_space<vmem>>, %arg6: memref<32x128xf32, #tpu.memory_space<vmem>>, %arg7: memref<1x128xf32, #tpu.memory_space<vmem>>, %arg8: memref<8x128xf32, #tpu.memory_space<vmem>>) attributes {dimension_semantics = [#tpu.dimension_semantics<parallel>], iteration_bounds = array<i64: 1>, scalar_prefetch = 0 : i64, scratch_operands = 0 : i64, tpu.core_type = #tpu.core_type<tc>, window_params = [{transform_indices = @transform_0, window_bounds = array<i64: 8, 10>}, {pipeline_mode = #tpu.pipeline_mode<synchronous>, transform_indices = @transform_1, window_bounds = array<i64: 10, 128>}, {pipeline_mode = #tpu.pipeline_mode<synchronous>, transform_indices = @transform_2, window_bounds = array<i64: 1, 128>}, {pipeline_mode = #tpu.pipeline_mode<synchronous>, transform_indices = @transform_3, window_bounds = array<i64: 128, 32>}, {pipeline_mode = #tpu.pipeline_mode<synchronous>, transform_indices = @transform_4, window_bounds = array<i64: 1, 32>}, {pipeline_mode = #tpu.pipeline_mode<synchronous>, transform_indices = @transform_5, window_bounds = array<i64: 32, 128>}, {pipeline_mode = #tpu.pipeline_mode<synchronous>, transform_indices = @transform_6, window_bounds = array<i64: 1, 128>}, {transform_indices = @transform_7, window_bounds = array<i64: 8, 128>}]} {
    %c0 = arith.constant 0 : index
    %c0_0 = arith.constant 0 : index
    %0 = vector.load %arg1[%c0, %c0_0] : memref<8x10xf32, #tpu.memory_space<vmem>>, vector<8x10xf32>
    %c0_1 = arith.constant 0 : index
    %c0_2 = arith.constant 0 : index
    %1 = vector.load %arg2[%c0_1, %c0_2] : memref<10x128xf32, #tpu.memory_space<vmem>>, vector<10x128xf32>
    %cst = arith.constant dense<0.000000e+00> : vector<8x128xf32>
    %2 = tpu.matmul %0, %1, %cst {dimension_numbers = #tpu.dot_dimension_numbers<[1], [0], [0], [1], [0, 0, 1, 1], [], []>} : vector<8x10xf32>, vector<10x128xf32>, vector<8x128xf32> -> vector<8x128xf32>
    %c0_3 = arith.constant 0 : index
    %c0_4 = arith.constant 0 : index
    %3 = vector.load %arg3[%c0_3, %c0_4] : memref<1x128xf32, #tpu.memory_space<vmem>>, vector<1x128xf32>
    %4 = vector.broadcast %3 : vector<1x128xf32> to vector<8x128xf32>
    %5 = arith.addf %2, %4 : vector<8x128xf32>
    %cst_5 = arith.constant 0.000000e+00 : f32
    %6 = vector.broadcast %cst_5 : f32 to vector<8x128xf32>
    %7 = arith.maximumf %5, %6 : vector<8x128xf32>
    %c0_6 = arith.constant 0 : index
    %c0_7 = arith.constant 0 : index
    %8 = vector.load %arg4[%c0_6, %c0_7] : memref<128x32xf32, #tpu.memory_space<vmem>>, vector<128x32xf32>
    %cst_8 = arith.constant dense<0.000000e+00> : vector<8x32xf32>
    %9 = tpu.matmul %7, %8, %cst_8 {dimension_numbers = #tpu.dot_dimension_numbers<[1], [0], [0], [1], [0, 0, 1, 1], [], []>} : vector<8x128xf32>, vector<128x32xf32>, vector<8x32xf32> -> vector<8x32xf32>
    %c0_9 = arith.constant 0 : index
    %c0_10 = arith.constant 0 : index
    %10 = vector.load %arg5[%c0_9, %c0_10] : memref<1x32xf32, #tpu.memory_space<vmem>>, vector<1x32xf32>
    %11 = vector.broadcast %10 : vector<1x32xf32> to vector<8x32xf32>
    %12 = arith.addf %9, %11 : vector<8x32xf32>
    %cst_11 = arith.constant 0.000000e+00 : f32
    %13 = vector.broadcast %cst_11 : f32 to vector<8x32xf32>
    %14 = arith.maximumf %12, %13 : vector<8x32xf32>
    %c0_12 = arith.constant 0 : index
    %c0_13 = arith.constant 0 : index
    %15 = vector.load %arg6[%c0_12, %c0_13] : memref<32x128xf32, #tpu.memory_space<vmem>>, vector<32x128xf32>
    %cst_14 = arith.constant dense<0.000000e+00> : vector<8x128xf32>
    %16 = tpu.matmul %14, %15, %cst_14 {dimension_numbers = #tpu.dot_dimension_numbers<[1], [0], [0], [1], [0, 0, 1, 1], [], []>} : vector<8x32xf32>, vector<32x128xf32>, vector<8x128xf32> -> vector<8x128xf32>
    %c0_15 = arith.constant 0 : index
    %c0_16 = arith.constant 0 : index
    %17 = vector.load %arg7[%c0_15, %c0_16] : memref<1x128xf32, #tpu.memory_space<vmem>>, vector<1x128xf32>
    %18 = vector.broadcast %17 : vector<1x128xf32> to vector<8x128xf32>
    %19 = arith.addf %16, %18 : vector<8x128xf32>
    %20 = arith.addf %7, %19 : vector<8x128xf32>
    %c0_17 = arith.constant 0 : index
    %c0_18 = arith.constant 0 : index
    %21 = vector.load %arg8[%c0_17, %c0_18] : memref<8x128xf32, #tpu.memory_space<vmem>>, vector<8x128xf32>
    tpu.vector_store %arg8[%c0_17, %c0_18], %20 {strides = array<i32>} : memref<8x128xf32, #tpu.memory_space<vmem>>, vector<8x128xf32>,
    return
  }
  func.func @transform_0(%arg0: i32) -> (i32, i32) {
    %c0_i32 = arith.constant 0 : i32
    %c0_i32_0 = arith.constant 0 : i32
    return %arg0, %c0_i32 : i32, i32
  }
  func.func @transform_1(%arg0: i32) -> (i32, i32) {
    %c0_i32 = arith.constant 0 : i32
    %c0_i32_0 = arith.constant 0 : i32
    %c0_i32_1 = arith.constant 0 : i32
    return %c0_i32, %c0_i32_0 : i32, i32
  }
  func.func @transform_2(%arg0: i32) -> (i32, i32) {
    %c0_i32 = arith.constant 0 : i32
    %c0_i32_0 = arith.constant 0 : i32
    %c0_i32_1 = arith.constant 0 : i32
    return %c0_i32, %c0_i32_0 : i32, i32
  }
  func.func @transform_3(%arg0: i32) -> (i32, i32) {
    %c0_i32 = arith.constant 0 : i32
    %c0_i32_0 = arith.constant 0 : i32
    %c0_i32_1 = arith.constant 0 : i32
    return %c0_i32, %c0_i32_0 : i32, i32
  }
  func.func @transform_4(%arg0: i32) -> (i32, i32) {
    %c0_i32 = arith.constant 0 : i32
    %c0_i32_0 = arith.constant 0 : i32
    %c0_i32_1 = arith.constant 0 : i32
    return %c0_i32, %c0_i32_0 : i32, i32
  }
  func.func @transform_5(%arg0: i32) -> (i32, i32) {
    %c0_i32 = arith.constant 0 : i32
    %c0_i32_0 = arith.constant 0 : i32
    %c0_i32_1 = arith.constant 0 : i32
    return %c0_i32, %c0_i32_0 : i32, i32
  }
  func.func @transform_6(%arg0: i32) -> (i32, i32) {
    %c0_i32 = arith.constant 0 : i32
    %c0_i32_0 = arith.constant 0 : i32
    %c0_i32_1 = arith.constant 0 : i32
    return %c0_i32, %c0_i32_0 : i32, i32
  }
  func.func @transform_7(%arg0: i32) -> (i32, i32) {
    %c0_i32 = arith.constant 0 : i32
    %c0_i32_0 = arith.constant 0 : i32
    return %arg0, %c0_i32 : i32, i32
  }
}

</mosaic_0001>

<bundles_post_ra>
// kernel: mlp_forward.1
= control target key start
LH: loop header
LB: loop body
LE: loop exit
PB: predicated region body
PF: predicated region fallthrough
CT: control target
= control target key end

     0   :  { %vm37_vm0 = vcmask 1041408   ;;  %vm33_vm1 = vcmask 80896   ;;  %vm111_vm2 = vcmask 261120   ;;  %s268_s1 = inlined_call_operand.vmem [shape: f32[10,128], index: 1, kind: input, shape index: {}]   ;;  %s269_s0 = inlined_call_operand.vmem [shape: f32[8,10], index: 0, kind: input, shape index: {}]   ;;  %s270_s3 = inlined_call_operand.vmem [shape: f32[128,32], index: 3, kind: input, shape index: {}]   ;;  %s271_s2 = inlined_call_operand.vmem [shape: f32[1,128], index: 2, kind: input, shape index: {}]   ;;  %s272_s4 = inlined_call_operand.vmem [shape: f32[1,32], index: 4, kind: input, shape index: {}]   ;;  %s273_s5 = inlined_call_operand.vmem [shape: f32[32,128], index: 5, kind: input, shape index: {}]   ;;  %s274_s6 = inlined_call_operand.vmem [shape: f32[1,128], index: 6, kind: input, shape index: {}]   ;;  %s275_s7 = inlined_call_operand.vmem [shape: f32[8,128], index: 7, kind: output, shape index: {}]  }
   0x1   :  { %v28_v0 = vld [vmem:[%s268_s1 + $0x8] sm:$0x3]  ;;  %v27_v1 = vld [vmem:[%s268_s1] sm:$0xff]  ;;  %v77_v3 = vld [vmem:[%s270_s3 + $0x78] sm:$0xff] }
   0x2   :  { %141 = vmatpush.msk.msra.mxu0 %vm37_vm0, %v28_v0  ;;  %v26_v2 = vld [vmem:[%s269_s0] sm:$0xff]  ;;  %v76_v4 = vld [vmem:[%s270_s3 + $0x70] sm:$0xff]  ;;  %82 = vmatpush.msra.mxu1 %v77_v3  ;;  %v75_v5 = vld [vmem:[%s270_s3 + $0x68] sm:$0xff] }
   0x3   :  { %v74_v6 = vld [vmem:[%s270_s3 + $0x60] sm:$0xff]  ;;  %v73_v7 = vld [vmem:[%s270_s3 + $0x58] sm:$0xff]  ;;  %v72_v8 = vld [vmem:[%s270_s3 + $0x50] sm:$0xff] }
   0x4   :  { %56 = vmatpush.msra.mxu0 %v27_v1  ;;  %83 = vmatpush.msra.mxu1 %v76_v4  ;;  %v71_v9 = vld [vmem:[%s270_s3 + $0x48] sm:$0xff]  ;;  %v70_v10 = vld [vmem:[%s270_s3 + $0x40] sm:$0xff]  ;;  %v69_v11 = vld [vmem:[%s270_s3 + $0x38] sm:$0xff] }
   0x5   :  { %142 = vmatmul.msk.f32.vlgmr.msra.gmra.mxu0 %vm33_vm1, %v26_v2  ;;  %v68_v12 = vld [vmem:[%s270_s3 + $0x30] sm:$0xff]  ;;  %v67_v13 = vld [vmem:[%s270_s3 + $0x28] sm:$0xff]  ;;  %v66_v14 = vld [vmem:[%s270_s3 + $0x20] sm:$0xff] }
   0x6   :  { %84 = vmatpush.msra.mxu1 %v75_v5  ;;  %v65_v15 = vld [vmem:[%s270_s3 + $0x18] sm:$0xff]  ;;  %v64_v16 = vld [vmem:[%s270_s3 + $0x10] sm:$0xff]  ;;  %v63_v17 = vld [vmem:[%s270_s3 + $0x8] sm:$0xff] }
   0x7   :  { %v62_v18 = vld [vmem:[%s270_s3] sm:$0xff]  ;;  %v106_v19 = vld [vmem:[%s273_s5 + $0x18] sm:$0xff]  ;;  %v105_v24 = vld [vmem:[%s273_s5 + $0x10] sm:$0xff] }
   0x8   :  { %85 = vmatpush.msra.mxu1 %v74_v6  ;;  %127 = vmatpush.msra.mxu2 %v106_v19  ;;  %v144_v20 = vld [vmem:[%s271_s2] ss:$0 sm:$0xff]  ;;  %v104_v25 = vld [vmem:[%s273_s5 + $0x8] sm:$0xff] }
   0x9   :  { %v103_v26 = vld [vmem:[%s273_s5] sm:$0xff] }
   0xa   :  { %86 = vmatpush.msra.mxu1 %v73_v7  ;;  %128 = vmatpush.msra.mxu2 %v105_v24  ;;  %v145_v27 = vld [vmem:[%s272_s4] ss:$0 sm:$0xff] }
   0xb   :  { %v146_v31 = vld [vmem:[%s274_s6] ss:$0 sm:$0xff] }
   0xc   :  { %87 = vmatpush.msra.mxu1 %v72_v8  ;;  %129 = vmatpush.msra.mxu2 %v104_v25 }
   0xe   :  { %88 = vmatpush.msra.mxu1 %v71_v9  ;;  %130 = vmatpush.msra.mxu2 %v103_v26 }
  0x10   :  { %89 = vmatpush.msra.mxu1 %v70_v10 }
  0x12   :  { %90 = vmatpush.msra.mxu1 %v69_v11 }
  0x14   :  { %91 = vmatpush.msra.mxu1 %v68_v12 }
  0x16   :  { %92 = vmatpush.msra.mxu1 %v67_v13 }
  0x18   :  { %93 = vmatpush.msra.mxu1 %v66_v14 }
  0x1a   :  { %94 = vmatpush.msra.mxu1 %v65_v15 }
  0x1c   :  { %95 = vmatpush.msra.mxu1 %v64_v16 }
  0x1e   :  { %96 = vmatpush.msra.mxu1 %v63_v17 }
  0x20   :  { %97 = vmatpush.msra.mxu1 %v62_v18 }
  0x82   :  { %v58_v21 = vpop.f32.mrf.mxu0 }
  0x83   :  { %v59_v22 = vadd.f32 %v144_v20, %v58_v21 }
  0x85   :  { %v61_v23 = vmax.f32 %v59_v22, 0.0 }
  0x87   :  { %98 = vmatmul.f32.vlgmr.msra.gmra.mxu1 %v61_v23 }
 0x104   :  { %v99_v28 = vpop.f32.mrf.mxu1 }
 0x105   :  { %v100_v29 = vadd.f32 %v145_v27, %v99_v28 }
 0x107   :  { %v102_v30 = vmax.f32 %v100_v29, 0.0 }
 0x109   :  { %143 = vmatmul.msk.f32.vlgmr.msra.gmra.mxu2 %vm111_vm2, %v102_v30 }
 0x18c   :  { %v132_v32 = vpop.f32.mrf.mxu2 }
 0x18d   :  { %v133_v33 = vadd.f32 %v146_v31, %v132_v32 }
 0x18f   :  { %v135_v34 = vadd.f32 %v133_v33, %v61_v23 }
 0x191   :  { %136 = vst [vmem:[%s275_s7] sm:$0xff] %v135_v34 }

</bundles_post_ra>
